<compile_context>
chip_gen: v6e
topology: v6e:2x2x1
jax: 0.10.0
libtpu: 0.0.40
codegen_flags: <defaults>
</compile_context>

<pallas_src>
import functools

import jax
import jax.numpy as jnp
from jax import lax
from jax.experimental import pallas as pl
from jax.experimental.pallas import tpu as pltpu


def channel_attention_kernel(x_ref, w1_ref, w2_ref, o_ref, sum_acc, max_acc,
                             *, hw_total, hw_tile):
    # x_ref:   (Bt, C, hw_tile)   slab of Bt batch rows, one spatial tile
    # w1_ref:  (HID, C)           fc1 weight (Conv2d C -> HID, 1x1, no bias)
    # w2_ref:  (C, HID)           fc2 weight (Conv2d HID -> C, 1x1, no bias)
    # o_ref:   (Bt, C)            sigmoid(fc2(relu(fc1(avg))) + fc2(relu(fc1(max))))
    # sum_acc: (Bt, C) f32 VMEM   running spatial sum
    # max_acc: (Bt, C) f32 VMEM   running spatial max
    hw_step = pl.program_id(1)
    n_hw = pl.num_programs(1)
    ragged = (hw_total % hw_tile) != 0

    @pl.when(hw_step == 0)
    def _():
        sum_acc[...] = jnp.zeros_like(sum_acc)
        max_acc[...] = jnp.full_like(max_acc, -jnp.inf)

    x = x_ref[...].astype(jnp.float32)                       # (Bt, C, hw_tile)

    def accumulate(x_sum, x_max):
        sum_acc[...] += jnp.sum(x_sum, axis=-1)              # (Bt, C)
        max_acc[...] = jnp.maximum(max_acc[...], jnp.max(x_max, axis=-1))

    if ragged:
        # Only the FINAL HW tile carries a padded tail (content unspecified).
        # All earlier tiles take the cheap unmasked path; the last tile masks
        # the tail with 0 for the sum and -inf for the max.
        @pl.when(hw_step < n_hw - 1)
        def _():
            accumulate(x, x)

        @pl.when(hw_step == n_hw - 1)
        def _():
            local = lax.broadcasted_iota(jnp.int32, x.shape, 2)
            valid = (hw_step * hw_tile + local) < hw_total
            accumulate(jnp.where(valid, x, 0.0),
                       jnp.where(valid, x, -jnp.inf))
    else:
        accumulate(x, x)

    @pl.when(hw_step == n_hw - 1)
    def _():
        avg = sum_acc[...] * (1.0 / float(hw_total))         # (Bt, C), true HW
        mx = max_acc[...]                                    # (Bt, C)
        bt = avg.shape[0]

        # Fused branches: one fc1 -> ReLU -> fc2 over a (2*Bt, C) matrix.
        pooled = jnp.concatenate([avg, mx], axis=0)          # (2*Bt, C)
        w1 = w1_ref[...].astype(jnp.float32)                 # (HID, C)
        w2 = w2_ref[...].astype(jnp.float32)                 # (C, HID)

        h = lax.dot_general(pooled, w1, (((1,), (1,)), ((), ())),
                            preferred_element_type=jnp.float32)  # (2*Bt, HID)
        h = jnp.maximum(h, 0.0)                              # ReLU
        y = lax.dot_general(h, w2, (((1,), (1,)), ((), ())),
                            preferred_element_type=jnp.float32)  # (2*Bt, C)

        out = y[:bt, :] + y[bt:, :]                          # avg + max branch
        o_ref[...] = jax.nn.sigmoid(out).astype(o_ref.dtype)


def _choose_tiles(B, C, HW, itemsize, x_budget_bytes):
    """Pick (Bt, hw_tile) so one x block stays under x_budget_bytes."""
    Bt = B if B <= 8 else 8               # == B or a fixed small batch slab
    row_bytes = Bt * C * itemsize
    if row_bytes * HW <= x_budget_bytes:
        return Bt, HW                     # full spatial extent fits: 1 HW step
    t = x_budget_bytes // row_bytes
    t = max(128, (t // 128) * 128)        # lane dim must be a multiple of 128
    return Bt, min(t, HW)


def channel_attention(x, w1, w2, *, x_block_budget_bytes=8 * 1024 * 1024):
    """x: (B, C, H, W) NCHW (f32 or bf16).  w1: (C//r, C).  w2: (C, C//r)."""
    B, C, H, W = x.shape
    HID = w1.shape[0]
    HW = H * W
    x_flat = x.reshape(B, C, HW)
    itemsize = x_flat.dtype.itemsize

    Bt, hw_tile = _choose_tiles(B, C, HW, itemsize, x_block_budget_bytes)
    grid = (pl.cdiv(B, Bt), pl.cdiv(HW, hw_tile))

    # VMEM budget: double-buffered x block + weights + scratch + headroom.
    x_block_bytes = Bt * C * hw_tile * itemsize
    vmem_limit = min(max(16 * 1024 * 1024, 3 * x_block_bytes + 4 * 1024 * 1024),
                     48 * 1024 * 1024)

    cost = pl.CostEstimate(
        flops=int(2 * B * C * HW + 8 * B * C * HID),
        transcendentals=int(B * C),
        bytes_accessed=int(x_flat.size * itemsize
                           + (w1.size + w2.size) * w1.dtype.itemsize
                           + B * C * 4),
    )

    kernel = functools.partial(channel_attention_kernel,
                               hw_total=HW, hw_tile=hw_tile)

    out = pl.pallas_call(
        kernel,
        out_shape=jax.ShapeDtypeStruct((B, C), jnp.float32),
        grid_spec=pltpu.PrefetchScalarGridSpec(
            num_scalar_prefetch=0,
            grid=grid,
            in_specs=[
                pl.BlockSpec((Bt, C, hw_tile), lambda b, s: (b, 0, s)),
                pl.BlockSpec((HID, C), lambda b, s: (0, 0)),
                pl.BlockSpec((C, HID), lambda b, s: (0, 0)),
            ],
            # Same block index across the HW axis -> output stays resident
            # across the reduction (finalized on the last HW step).
            out_specs=pl.BlockSpec((Bt, C), lambda b, s: (b, 0)),
            scratch_shapes=[
                pltpu.VMEM((Bt, C), jnp.float32),   # running sum
                pltpu.VMEM((Bt, C), jnp.float32),   # running max
            ],
        ),
        compiler_params=pltpu.CompilerParams(
            dimension_semantics=("parallel", "arbitrary"),
            vmem_limit_bytes=int(vmem_limit),
        ),
        cost_estimate=cost,
    )(x_flat, w1, w2)

    # Match PyTorch output shape (B, C, 1, 1).
    return out.reshape(B, C, 1, 1)


def channel_attention_ref(x, w1, w2):
    """Pure-JAX reference mirroring the PyTorch module."""
    xf = x.astype(jnp.float32)
    avg = jnp.mean(xf, axis=(2, 3))               # (B, C)
    mx = jnp.max(xf, axis=(2, 3))                 # (B, C)

    def mlp(v):
        h = jnp.maximum(v @ w1.T.astype(jnp.float32), 0.0)
        return h @ w2.T.astype(jnp.float32)

    out = jax.nn.sigmoid(mlp(avg) + mlp(mx))
    return out.reshape(*out.shape, 1, 1)


if __name__ == "__main__":
    # Shapes consistent with the module: in_planes=64, ratio=16 -> hidden=4.
    B, C, H, W = 2, 64, 16, 16
    RATIO = 16
    HID = C // RATIO

    key = jax.random.PRNGKey(0)
    kx, k1, k2 = jax.random.split(key, 3)

    x = jax.random.normal(kx, (B, C, H, W), dtype=jnp.float32)
    # Deterministic Conv2d-1x1 weights (kaiming-ish scale), no bias.
    w1 = jax.random.normal(k1, (HID, C), dtype=jnp.float32) * (1.0 / jnp.sqrt(C))
    w2 = jax.random.normal(k2, (C, HID), dtype=jnp.float32) * (1.0 / jnp.sqrt(HID))

    out = channel_attention(x, w1, w2)
    out = jax.block_until_ready(out)

    ref = channel_attention_ref(x, w1, w2)
    assert out.shape == (B, C, 1, 1)
    assert jnp.allclose(out, ref, atol=1e-5, rtol=1e-5), "mismatch vs reference"

    # Also exercise the multi-step HW ("arbitrary") axis with a ragged spatial
    # extent so the padded-tail masking (-inf / 0, last tile only) and the
    # running accumulators are covered: HW=400, forced hw_tile=128 -> 4 steps,
    # last one padded.
    H2, W2 = 20, 20
    x2 = jax.random.normal(k2, (B, C, H2, W2), dtype=jnp.float32)
    out2 = jax.block_until_ready(
        channel_attention(x2, w1, w2, x_block_budget_bytes=64 * 1024))
    ref2 = channel_attention_ref(x2, w1, w2)
    assert out2.shape == (B, C, 1, 1)
    assert jnp.allclose(out2, ref2, atol=1e-5, rtol=1e-5), "mismatch (tiled HW)"

    # bf16 input path (accumulation stays f32).
    x3 = x.astype(jnp.bfloat16)
    out3 = jax.block_until_ready(channel_attention(x3, w1, w2))
    ref3 = channel_attention_ref(x3, w1, w2)
    assert jnp.allclose(out3, ref3, atol=2e-2, rtol=2e-2), "mismatch (bf16)"

    print("KERNEL_OK")
</pallas_src>

<mosaic_0001>
module attributes {stable_mosaic.version = 11 : i64} {
  func.func @channel_attention_kernel(%arg0: i32, %arg1: i32, %arg2: memref<2x64x256xf32, #tpu.memory_space<vmem>>, %arg3: memref<4x64xf32, #tpu.memory_space<vmem>>, %arg4: memref<64x4xf32, #tpu.memory_space<vmem>>, %arg5: memref<2x64xf32, #tpu.memory_space<vmem>>, %arg6: memref<2x64xf32, #tpu.memory_space<vmem>>, %arg7: memref<2x64xf32, #tpu.memory_space<vmem>>) attributes {dimension_semantics = [#tpu.dimension_semantics<parallel>, #tpu.dimension_semantics<arbitrary>], iteration_bounds = array<i64: 1, 1>, scalar_prefetch = 0 : i64, scratch_operands = 2 : i64, tpu.core_type = #tpu.core_type<tc>, window_params = [{transform_indices = @transform_0, window_bounds = array<i64: 2, 64, 256>}, {pipeline_mode = #tpu.pipeline_mode<synchronous>, transform_indices = @transform_1, window_bounds = array<i64: 4, 64>}, {pipeline_mode = #tpu.pipeline_mode<synchronous>, transform_indices = @transform_2, window_bounds = array<i64: 64, 4>}, {transform_indices = @transform_3, window_bounds = array<i64: 2, 64>}]} {
    %c0_i32 = arith.constant 0 : i32
    %0 = arith.cmpi eq, %arg1, %c0_i32 : i32
    %1 = arith.extui %0 : i1 to i32
    %c0_i32_0 = arith.constant 0 : i32
    %2 = arith.cmpi ne, %1, %c0_i32_0 : i32
    scf.if %2 {
      %cst_14 = arith.constant 0.000000e+00 : f32
      %15 = vector.broadcast %cst_14 : f32 to vector<2x64xf32>
      %c0_15 = arith.constant 0 : index
      %c0_16 = arith.constant 0 : index
      %16 = vector.load %arg6[%c0_15, %c0_16] : memref<2x64xf32, #tpu.memory_space<vmem>>, vector<2x64xf32>
      tpu.vector_store %arg6[%c0_15, %c0_16], %15 {strides = array<i32>} : memref<2x64xf32, #tpu.memory_space<vmem>>, vector<2x64xf32>,
      %cst_17 = arith.constant 0xFF800000 : f32
      %17 = vector.broadcast %cst_17 : f32 to vector<2x64xf32>
      %c0_18 = arith.constant 0 : index
      %c0_19 = arith.constant 0 : index
      %18 = vector.load %arg7[%c0_18, %c0_19] : memref<2x64xf32, #tpu.memory_space<vmem>>, vector<2x64xf32>
      tpu.vector_store %arg7[%c0_18, %c0_19], %17 {strides = array<i32>} : memref<2x64xf32, #tpu.memory_space<vmem>>, vector<2x64xf32>,
    } else {
    }
    %c0 = arith.constant 0 : index
    %c0_1 = arith.constant 0 : index
    %c0_2 = arith.constant 0 : index
    %3 = vector.load %arg2[%c0, %c0_1, %c0_2] : memref<2x64x256xf32, #tpu.memory_space<vmem>>, vector<2x64x256xf32>
    %c0_3 = arith.constant 0 : index
    %c0_4 = arith.constant 0 : index
    %4 = vector.load %arg6[%c0_3, %c0_4] : memref<2x64xf32, #tpu.memory_space<vmem>>, vector<2x64xf32>
    %cst = arith.constant dense<0.000000e+00> : vector<2x64xf32>
    %5 = vector.multi_reduction <add>, %3, %cst [2] : vector<2x64x256xf32> to vector<2x64xf32>
    %6 = arith.addf %4, %5 : vector<2x64xf32>
    %c0_5 = arith.constant 0 : index
    %c0_6 = arith.constant 0 : index
    %7 = vector.load %arg6[%c0_5, %c0_6] : memref<2x64xf32, #tpu.memory_space<vmem>>, vector<2x64xf32>
    tpu.vector_store %arg6[%c0_5, %c0_6], %6 {strides = array<i32>} : memref<2x64xf32, #tpu.memory_space<vmem>>, vector<2x64xf32>,
    %c0_7 = arith.constant 0 : index
    %c0_8 = arith.constant 0 : index
    %8 = vector.load %arg7[%c0_7, %c0_8] : memref<2x64xf32, #tpu.memory_space<vmem>>, vector<2x64xf32>
    %cst_9 = arith.constant dense<0xFF800000> : vector<2x64xf32>
    %9 = vector.multi_reduction <maximumf>, %3, %cst_9 [2] : vector<2x64x256xf32> to vector<2x64xf32>
    %10 = arith.maximumf %8, %9 : vector<2x64xf32>
    %c0_10 = arith.constant 0 : index
    %c0_11 = arith.constant 0 : index
    %11 = vector.load %arg7[%c0_10, %c0_11] : memref<2x64xf32, #tpu.memory_space<vmem>>, vector<2x64xf32>
    tpu.vector_store %arg7[%c0_10, %c0_11], %10 {strides = array<i32>} : memref<2x64xf32, #tpu.memory_space<vmem>>, vector<2x64xf32>,
    %c0_i32_12 = arith.constant 0 : i32
    %12 = arith.cmpi eq, %arg1, %c0_i32_12 : i32
    %13 = arith.extui %12 : i1 to i32
    %c0_i32_13 = arith.constant 0 : i32
    %14 = arith.cmpi ne, %13, %c0_i32_13 : i32
    scf.if %14 {
      %c0_14 = arith.constant 0 : index
      %c0_15 = arith.constant 0 : index
      %15 = vector.load %arg6[%c0_14, %c0_15] : memref<2x64xf32, #tpu.memory_space<vmem>>, vector<2x64xf32>
      %cst_16 = arith.constant 3.906250e-03 : f32
      %16 = vector.broadcast %cst_16 : f32 to vector<2x64xf32>
      %17 = arith.mulf %15, %16 : vector<2x64xf32>
      %c0_17 = arith.constant 0 : index
      %c0_18 = arith.constant 0 : index
      %18 = vector.load %arg7[%c0_17, %c0_18] : memref<2x64xf32, #tpu.memory_space<vmem>>, vector<2x64xf32>
      %19 = tpu.concatenate %17, %18 in 0 : vector<2x64xf32>, vector<2x64xf32> -> vector<4x64xf32>
      %c0_19 = arith.constant 0 : index
      %c0_20 = arith.constant 0 : index
      %20 = vector.load %arg3[%c0_19, %c0_20] : memref<4x64xf32, #tpu.memory_space<vmem>>, vector<4x64xf32>
      %c0_21 = arith.constant 0 : index
      %c0_22 = arith.constant 0 : index
      %21 = vector.load %arg4[%c0_21, %c0_22] : memref<64x4xf32, #tpu.memory_space<vmem>>, vector<64x4xf32>
      %cst_23 = arith.constant dense<0.000000e+00> : vector<4x4xf32>
      %22 = tpu.matmul %19, %20, %cst_23 {dimension_numbers = #tpu.dot_dimension_numbers<[1], [1], [0], [0], [0, 0, 1, 0], [], []>} : vector<4x64xf32>, vector<4x64xf32>, vector<4x4xf32> -> vector<4x4xf32>
      %cst_24 = arith.constant 0.000000e+00 : f32
      %23 = vector.broadcast %cst_24 : f32 to vector<4x4xf32>
      %24 = arith.maximumf %22, %23 : vector<4x4xf32>
      %cst_25 = arith.constant dense<0.000000e+00> : vector<4x64xf32>
      %25 = tpu.matmul %24, %21, %cst_25 {dimension_numbers = #tpu.dot_dimension_numbers<[1], [1], [0], [0], [0, 0, 1, 0], [], []>} : vector<4x4xf32>, vector<64x4xf32>, vector<4x64xf32> -> vector<4x64xf32>
      %26 = vector.extract_strided_slice %25 {offsets = [0, 0], sizes = [2, 64], strides = [1, 1]} : vector<4x64xf32> to vector<2x64xf32>
      %27 = vector.extract_strided_slice %25 {offsets = [2, 0], sizes = [2, 64], strides = [1, 1]} : vector<4x64xf32> to vector<2x64xf32>
      %28 = arith.addf %26, %27 : vector<2x64xf32>
      %29 = arith.negf %28 : vector<2x64xf32>
      %30 = math.exp %29 : vector<2x64xf32>
      %cst_26 = arith.constant 1.000000e+00 : f32
      %31 = vector.broadcast %cst_26 : f32 to vector<2x64xf32>
      %32 = arith.addf %31, %30 : vector<2x64xf32>
      %33 = arith.divf %31, %32 : vector<2x64xf32>
      %c0_27 = arith.constant 0 : index
      %c0_28 = arith.constant 0 : index
      %34 = vector.load %arg5[%c0_27, %c0_28] : memref<2x64xf32, #tpu.memory_space<vmem>>, vector<2x64xf32>
      tpu.vector_store %arg5[%c0_27, %c0_28], %33 {strides = array<i32>} : memref<2x64xf32, #tpu.memory_space<vmem>>, vector<2x64xf32>,
    } else {
    }
    return
  }
  func.func @transform_0(%arg0: i32, %arg1: i32) -> (i32, i32, i32) {
    %c0_i32 = arith.constant 0 : i32
    %c0_i32_0 = arith.constant 0 : i32
    return %arg0, %c0_i32, %arg1 : i32, i32, i32
  }
  func.func @transform_1(%arg0: i32, %arg1: i32) -> (i32, i32) {
    %c0_i32 = arith.constant 0 : i32
    %c0_i32_0 = arith.constant 0 : i32
    %c0_i32_1 = arith.constant 0 : i32
    return %c0_i32, %c0_i32_0 : i32, i32
  }
  func.func @transform_2(%arg0: i32, %arg1: i32) -> (i32, i32) {
    %c0_i32 = arith.constant 0 : i32
    %c0_i32_0 = arith.constant 0 : i32
    %c0_i32_1 = arith.constant 0 : i32
    return %c0_i32, %c0_i32_0 : i32, i32
  }
  func.func @transform_3(%arg0: i32, %arg1: i32) -> (i32, i32) {
    %c0_i32 = arith.constant 0 : i32
    %c0_i32_0 = arith.constant 0 : i32
    return %arg0, %c0_i32 : i32, i32
  }
}

</mosaic_0001>

<bundles_post_ra>
// kernel: tpu_custom_call.1
= control target key start
LH: loop header
LB: loop body
LE: loop exit
PB: predicated region body
PF: predicated region fallthrough
CT: control target
= control target key end

     0   :  { %8 = vsyncpa [#allocation5], 0  ;;  %s912_s0 = inlined_call_operand.hbm [shape: f32[2,64,256], index: 0, kind: input, shape index: {}]   ;;  %s913_s1 = inlined_call_operand.vmem [shape: f32[4,64], index: 1, kind: input, shape index: {}]   ;;  %s914_s2 = inlined_call_operand.vmem [shape: f32[64,4], index: 2, kind: input, shape index: {}]   ;;  %s915_s3 = inlined_call_operand.hbm [shape: f32[2,64], index: 3, kind: output, shape index: {}]  }
   0x1   :  { %9 = vsyncpa [#allocation6], 0  ;;  %s704_s12 = smov [#allocation4]  }
   0x2   :  { %s15_s13 = sshll.u32 %s704_s12, 4  ;;  %s16_s13 = int_to_ptr.vmem [resolvable:$true] %s15_s13 }
   0x3   :  { %s668_s14 = scalar_lea.vmem %s16_s13, 4096  ;;  %p673_p1 = scmp.lt.s32.totalorder %s16_s13, %s16_s13 }
   0x4   :  { %p669_p0 = scmp.ne.s32.totalorder %s16_s13, %s668_s14  ;;  %p674_p2 = scmp.lt.s32.totalorder %s668_s14, %s668_s14 }
   0x6   :  { %p675_p3 = por %p674_p2, %p673_p1 }
   0x8   :  { %p676_p4 = pnand %p675_p3, %p669_p0 }
   0xa   :  { %679 = shalt.err (!%p676_p4)
}
   0xb   :  { %s705_s15 = smov 256   ;;  %s706_s16 = smov 16  }
   0xc   :  { %21 = dma.hbm_to_vmem [thread:$0]  %s912_s0, 4096, %s16_s13, [#allocation5], %s705_s15, %s705_s15, %s706_s16  }
   0xd   :  { %700 = dma.done.wait [#allocation5], 4096  }
   0xe   :  { %701 = vsyncadd [#allocation5], 4294963200  ;;  %v52_v0 = vld [vmem:[#allocation4 + $0x80] sm:$0xff]  ;;  %v53_v1 = vld [vmem:[#allocation4 + $0x88] sm:$0xff]  ;;  %vm33_vm0 = vcmask 517120   ;;  %vm400_vm1 = vcmask 523264  }
   0xf   :  { %v36_v2 = vld [vmem:[#allocation4] sm:$0xff]  ;;  %v93_v3 = vadd.f32 %v53_v1, %v52_v0  ;;  %v37_v4 = vld [vmem:[#allocation4 + $0x8] sm:$0xff]  ;;  %v54_v5 = vld [vmem:[#allocation4 + $0x90] sm:$0xff]  ;;  %v258_v15 = vmax.f32 %v52_v0, %v53_v1  ;;  %v707_v0 = vmov 0.0   ;;  %v708_v1 = vmov -inf   ;;  %s710_s8 = smov [#allocation7]  }
  0x10   :  { %v55_v6 = vld [vmem:[#allocation4 + $0x98] sm:$0xff]  ;;  %v69_v7 = vadd.f32 %v37_v4, %v36_v2  ;;  %v38_v8 = vld [vmem:[#allocation4 + $0x10] sm:$0xff]  ;;  %v234_v13 = vmax.f32 %v36_v2, %v37_v4  ;;  %v56_v16 = vld [vmem:[#allocation4 + $0xa0] sm:$0xff]  ;;  %34 = vst.msk [vmem:[#allocation2] sm:$0x3] %vm33_vm0, %v707_v0  ;;  %625 = vmatprep.subr.mxu0 %v707_v0  ;;  %630 = vmatprep.subr.mxu1 %v707_v0  ;;  %vm709_vm2 = vmmov 0  }
  0x11   :  { %v39_v9 = vld [vmem:[#allocation4 + $0x18] sm:$0xff]  ;;  %94 = vadd.xlane.f32.xlu1 %v93_v3  ;;  %v96_v10 = vadd.f32 %v55_v6, %v54_v5  ;;  %v261_v14 = vmax.f32 %v54_v5, %v55_v6  ;;  %v57_v17 = vld [vmem:[#allocation4 + $0xa8] sm:$0xff]  ;;  %v40_v18 = vld [vmem:[#allocation4 + $0x20] sm:$0xff]  ;;  %35 = vst.msk [vmem:[#allocation3] sm:$0x3] %vm33_vm0, %v708_v1  ;;  %627 = vmatprep.mubr.msk.f32.mxu0 %vm709_vm2, %v707_v0  ;;  %vm478_vm3 = vcmask 31744  }
  0x12   :  { %70 = vadd.xlane.f32.xlu0 %v69_v7  ;;  %v72_v11 = vadd.f32 %v39_v9, %v38_v8  ;;  %v237_v12 = vmax.f32 %v38_v8, %v39_v9  ;;  %v41_v19 = vld [vmem:[#allocation4 + $0x28] sm:$0xff]  ;;  %v99_v20 = vadd.f32 %v57_v17, %v56_v16  ;;  %v264_v22 = vmax.f32 %v56_v16, %v57_v17  ;;  %v58_v24 = vld [vmem:[#allocation4 + $0xb0] sm:$0xff]  ;;  %v59_v25 = vld [vmem:[#allocation4 + $0xb8] sm:$0xff]  ;;  %s593_s9 = sshll.u32 %s710_s8, 4  ;;  %s594_s9 = int_to_ptr.vmem [resolvable:$true] %s593_s9 }
  0x13   :  { %v75_v21 = vadd.f32 %v41_v19, %v40_v18  ;;  %v240_v23 = vmax.f32 %v40_v18, %v41_v19  ;;  %v42_v26 = vld [vmem:[#allocation4 + $0x30] sm:$0xff]  ;;  %v43_v27 = vld [vmem:[#allocation4 + $0x38] sm:$0xff]  ;;  %v102_v28 = vadd.f32 %v59_v25, %v58_v24  ;;  %v267_v30 = vmax.f32 %v58_v24, %v59_v25  ;;  %v60_v32 = vld [vmem:[#allocation4 + $0xc0] sm:$0xff]  ;;  %646 = vmatprep.mubr.msk.f32.mxu1 %vm709_vm2, %v707_v0  ;;  %p685_p6 = scmp.lt.s32.totalorder %s594_s9, %s594_s9 }
  0x14   :  { %v78_v29 = vadd.f32 %v43_v27, %v42_v26  ;;  %v243_v31 = vmax.f32 %v42_v26, %v43_v27  ;;  %v61_v33 = vld [vmem:[#allocation4 + $0xc8] sm:$0xff]  ;;  %v44_v34 = vld [vmem:[#allocation4 + $0x40] sm:$0xff]  ;;  %v62_v40 = vld [vmem:[#allocation4 + $0xd0] sm:$0xff]  ;;  %v133_v27 = vlaneseq  ;;  %vm144_vm4 = vcmask 130112  }
  0x15   :  { %97 = vadd.xlane.f32.xlu1 %v96_v10  ;;  %v45_v35 = vld [vmem:[#allocation4 + $0x48] sm:$0xff]  ;;  %v105_v36 = vadd.f32 %v61_v33, %v60_v32  ;;  %v270_v38 = vmax.f32 %v60_v32, %v61_v33  ;;  %v63_v41 = vld [vmem:[#allocation4 + $0xd8] sm:$0xff]  ;;  %v46_v42 = vld [vmem:[#allocation4 + $0x50] sm:$0xff]  ;;  %vm151_vm5 = vcmask 195712   ;;  %vm158_vm6 = vcmask 261312  }
  0x16   :  { %73 = vadd.xlane.f32.xlu0 %v72_v11  ;;  %v81_v37 = vadd.f32 %v45_v35, %v44_v34  ;;  %v246_v39 = vmax.f32 %v44_v34, %v45_v35  ;;  %v47_v43 = vld [vmem:[#allocation4 + $0x58] sm:$0xff]  ;;  %v108_v44 = vadd.f32 %v63_v41, %v62_v40  ;;  %v273_v46 = vmax.f32 %v62_v40, %v63_v41  ;;  %v64_v48 = vld [vmem:[#allocation4 + $0xe0] sm:$0xff]  ;;  %v65_v49 = vld [vmem:[#allocation4 + $0xe8] sm:$0xff] }
  0x17   :  { %v84_v45 = vadd.f32 %v47_v43, %v46_v42  ;;  %v249_v47 = vmax.f32 %v46_v42, %v47_v43  ;;  %v48_v50 = vld [vmem:[#allocation4 + $0x60] sm:$0xff]  ;;  %v49_v51 = vld [vmem:[#allocation4 + $0x68] sm:$0xff]  ;;  %v111_v52 = vadd.f32 %v65_v49, %v64_v48  ;;  %v276_v54 = vmax.f32 %v64_v48, %v65_v49  ;;  %v66_v56 = vld [vmem:[#allocation4 + $0xf0] sm:$0xff] }
  0x18   :  { %v87_v53 = vadd.f32 %v49_v51, %v48_v50  ;;  %v252_v55 = vmax.f32 %v48_v50, %v49_v51  ;;  %v67_v57 = vld [vmem:[#allocation4 + $0xf8] sm:$0xff]  ;;  %v50_v58 = vld [vmem:[#allocation4 + $0x70] sm:$0xff]  ;;  %v397_v5 = vld [vmem:[%s914_s2 + $0x28] sm:$0xff]  ;;  %v136_v33 = vshrl.u32 %v133_v27, 7  ;;  %vm165_vm7 = vcmask 326912  }
  0x19   :  { %238 = vmax.xlane.f32.xlu1 %v237_v12  ;;  %v51_v59 = vld [vmem:[#allocation4 + $0x78] sm:$0xff]  ;;  %v114_v60 = vadd.f32 %v67_v57, %v66_v56  ;;  %v279_v62 = vmax.f32 %v66_v56, %v67_v57  ;;  %v398_v4 = vld [vmem:[%s914_s2 + $0x30] sm:$0xff]  ;;  %v393_v9 = vld [vmem:[%s914_s2 + $0x8] sm:$0xff]  ;;  %vm172_vm8 = vcmask 392512   ;;  %vm179_vm9 = vcmask 458112  }
  0x1a   :  { %235 = vmax.xlane.f32.xlu0 %v234_v13  ;;  %v90_v61 = vadd.f32 %v51_v59, %v50_v58  ;;  %v255_v63 = vmax.f32 %v50_v58, %v51_v59  ;;  %v391_v2 = vld [vmem:[%s913_s1] sm:$0xf]  ;;  %v399_v3 = vld [vmem:[%s914_s2 + $0x38] sm:$0xff]  ;;  %v394_v8 = vld [vmem:[%s914_s2 + $0x10] sm:$0xff]  ;;  %vm186_vm10 = vcmask 523712   ;;  %vm227_vm11 = vcmask 1041409  }
  0x1b   :  { %626 = vmatpush3.xpose.msk.msra.mxu0 %vm400_vm1, %v391_v2  ;;  %631 = vmatpush3.xpose.msk.msra.mxu1 %vm478_vm3, %v399_v3  ;;  %v396_v6 = vld [vmem:[%s914_s2 + $0x20] sm:$0xff]  ;;  %v395_v7 = vld [vmem:[%s914_s2 + $0x18] sm:$0xff]  ;;  %vm389_vm12 = vcmask 1041408  }
  0x1c   :  { %632 = vmatprep.subr.mxu1 %v707_v0 }
  0x1d   :  { %262 = vmax.xlane.f32.xlu1 %v261_v14 }
  0x1e   :  { %259 = vmax.xlane.f32.xlu0 %v258_v15 }
  0x1f   :  { %633 = vmatpush3.xpose.msk.msra.mxu1 %vm478_vm3, %v398_v4 }
  0x20   :  { %634 = vmatprep.subr.mxu1 %v707_v0 }
  0x21   :  { %100 = vadd.xlane.f32.xlu1 %v99_v20 }
  0x22   :  { %76 = vadd.xlane.f32.xlu0 %v75_v21 }
  0x23   :  { %635 = vmatpush3.xpose.msk.msra.mxu1 %vm478_vm3, %v397_v5 }
  0x24   :  { %636 = vmatprep.subr.mxu1 %v707_v0 }
  0x25   :  { %265 = vmax.xlane.f32.xlu1 %v264_v22 }
  0x26   :  { %241 = vmax.xlane.f32.xlu0 %v240_v23 }
  0x27   :  { %637 = vmatpush3.xpose.msk.msra.mxu1 %vm478_vm3, %v396_v6 }
  0x28   :  { %638 = vmatprep.subr.mxu1 %v707_v0 }
  0x29   :  { %103 = vadd.xlane.f32.xlu1 %v102_v28 }
  0x2a   :  { %79 = vadd.xlane.f32.xlu0 %v78_v29 }
  0x2b   :  { %639 = vmatpush3.xpose.msk.msra.mxu1 %vm478_vm3, %v395_v7 }
  0x2c   :  { %640 = vmatprep.subr.mxu1 %v707_v0 }
  0x2d   :  { %268 = vmax.xlane.f32.xlu1 %v267_v30  ;;  %v134_v30 = vand.u32 127, %v133_v27 }
  0x2e   :  { %244 = vmax.xlane.f32.xlu0 %v243_v31 }
  0x2f   :  { %641 = vmatpush3.xpose.msk.msra.mxu1 %vm478_vm3, %v394_v8  ;;  %v139_v32 = vadd.s32 4294967288, %v134_v30  ;;  %v146_v34 = vadd.s32 4294967280, %v134_v30  ;;  %v174_v40 = vadd.s32 4294967248, %v134_v30  ;;  %v181_v42 = vadd.s32 4294967240, %v134_v30 }
  0x30   :  { %642 = vmatprep.subr.mxu1 %v707_v0  ;;  %v137_v43 = vsub.s32 %v134_v30, %v136_v33 }
  0x31   :  { %106 = vadd.xlane.f32.xlu1 %v105_v36  ;;  %v153_v36 = vadd.s32 4294967272, %v134_v30  ;;  %v142_v41 = vsub.s32 %v139_v32, %v136_v33  ;;  %v822_v50 = vsub.s32 %v174_v40, %v136_v33 }
  0x32   :  { %82 = vadd.xlane.f32.xlu0 %v81_v37  ;;  %v160_v37 = vadd.s32 4294967264, %v134_v30 }
  0x33   :  { %643 = vmatpush3.xpose.msk.msra.mxu1 %vm478_vm3, %v393_v9 }
  0x34   :  { %644 = vmatprep.subr.mxu1 %v707_v0 }
  0x35   :  { %271 = vmax.xlane.f32.xlu1 %v270_v38 }
  0x36   :  { %247 = vmax.xlane.f32.xlu0 %v246_v39  ;;  %v167_v39 = vadd.s32 4294967256, %v134_v30 }
  0x38   :  { %v820_v49 = vsub.s32 %v167_v39, %v136_v33 }
  0x39   :  { %109 = vadd.xlane.f32.xlu1 %v108_v44  ;;  %v149_v44 = vsub.s32 %v146_v34, %v136_v33 }
  0x3a   :  { %85 = vadd.xlane.f32.xlu0 %v84_v45 }
  0x3d   :  { %274 = vmax.xlane.f32.xlu1 %v273_v46  ;;  %v814_v46 = vsub.s32 %v153_v36, %v136_v33 }
  0x3e   :  { %250 = vmax.xlane.f32.xlu0 %v249_v47  ;;  %v816_v47 = vsub.s32 %v160_v37, %v136_v33 }
  0x41   :  { %112 = vadd.xlane.f32.xlu1 %v111_v52 }
  0x42   :  { %88 = vadd.xlane.f32.xlu0 %v87_v53  ;;  %v826_v53 = vsub.s32 %v181_v42, %v136_v33  ;;  %v68_v42 = vld [vmem:[#allocation2] sm:$0x3] }
  0x45   :  { %277 = vmax.xlane.f32.xlu1 %v276_v54 }
  0x46   :  { %253 = vmax.xlane.f32.xlu0 %v252_v55 }
  0x49   :  { %115 = vadd.xlane.f32.xlu1 %v114_v60 }
  0x4a   :  { %91 = vadd.xlane.f32.xlu0 %v90_v61 }
  0x4d   :  { %280 = vmax.xlane.f32.xlu1 %v279_v62 }
  0x4e   :  { %256 = vmax.xlane.f32.xlu0 %v255_v63 }
  0x9a   :  { %v768_v10 = vpop.xlane.xlu1 %94 }
  0x9b   :  { %v770_v11 = vpop.xlane.xlu0 %70  ;;  %v191_v59 = vrot.slane %v768_v10, %v137_v43 }
  0x9c   :  { %v138_v60 = vrot.slane %v770_v11, %v137_v43 }
  0x9e   :  { %v772_v12 = vpop.xlane.xlu1 %97 }
  0x9f   :  { %v774_v13 = vpop.xlane.xlu0 %73  ;;  %v195_v51 = vrot.slane %v772_v12, %v142_v41 }
  0xa0   :  { %v143_v52 = vrot.slane %v774_v13, %v142_v41 }
  0xa1   :  { %v196_v3 = vsel %vm144_vm4, %v195_v51, %v191_v59  ;;  %v233_v59 = vld [vmem:[#allocation3] sm:$0x3] }
  0xa2   :  { %v776_v14 = vpop.xlane.xlu1 %238  ;;  %v145_v4 = vsel %vm144_vm4, %v143_v52, %v138_v60 }
  0xa3   :  { %v778_v15 = vpop.xlane.xlu0 %235  ;;  %v305_v54 = vrot.slane %v776_v14, %v142_v41 }
  0xa4   :  { %v301_v55 = vrot.slane %v778_v15, %v137_v43 }
  0xa6   :  { %v780_v16 = vpop.xlane.xlu1 %262  ;;  %v306_v6 = vsel %vm144_vm4, %v305_v54, %v301_v55 }
  0xa7   :  { %v782_v17 = vpop.xlane.xlu0 %259  ;;  %v344_v56 = vrot.slane %v780_v16, %v142_v41 }
  0xa8   :  { %v340_v57 = vrot.slane %v782_v17, %v137_v43 }
  0xaa   :  { %v784_v18 = vpop.xlane.xlu1 %100  ;;  %v345_v7 = vsel %vm144_vm4, %v344_v56, %v340_v57 }
  0xab   :  { %v786_v19 = vpop.xlane.xlu0 %76  ;;  %v200_v61 = vrot.slane %v784_v18, %v149_v44 }
  0xac   :  { %v150_v62 = vrot.slane %v786_v19, %v149_v44 }
  0xad   :  { %v201_v11 = vsel %vm151_vm5, %v200_v61, %v196_v3  ;;  %v392_v3 = vld [vmem:[%s914_s2] sm:$0xff]  ;;  %s680_s2 = scalar_lea.vmem %s594_s9, 32 }
  0xae   :  { %v788_v20 = vpop.xlane.xlu1 %265  ;;  %v152_v12 = vsel %vm151_vm5, %v150_v62, %v145_v4  ;;  %645 = vmatpush3.xpose.msk.msra.mxu1 %vm478_vm3, %v392_v3  ;;  %p681_p5 = scmp.ne.s32.totalorder %s594_s9, %s680_s2  ;;  %p686_p7 = scmp.lt.s32.totalorder %s680_s2, %s680_s2 }
  0xaf   :  { %v790_v21 = vpop.xlane.xlu0 %241  ;;  %v349_v0 = vrot.slane %v788_v20, %v149_v44 }
  0xb0   :  { %v310_v1 = vrot.slane %v790_v21, %v149_v44  ;;  %p687_p8 = por %p686_p7, %p685_p6 }
  0xb1   :  { %v350_v16 = vsel %vm151_vm5, %v349_v0, %v345_v7 }
  0xb2   :  { %v792_v22 = vpop.xlane.xlu1 %103  ;;  %v311_v17 = vsel %vm151_vm5, %v310_v1, %v306_v6  ;;  %p688_p9 = pnand %p687_p8, %p681_p5 }
  0xb3   :  { %v794_v23 = vpop.xlane.xlu0 %79  ;;  %v205_v2 = vrot.slane %v792_v22, %v814_v46 }
  0xb4   :  { %v157_v5 = vrot.slane %v794_v23, %v814_v46 }
  0xb5   :  { %v206_v18 = vsel %vm158_vm6, %v205_v2, %v201_v11 }
  0xb6   :  { %v796_v24 = vpop.xlane.xlu1 %268  ;;  %v159_v20 = vsel %vm158_vm6, %v157_v5, %v152_v12 }
  0xb7   :  { %v798_v25 = vpop.xlane.xlu0 %244  ;;  %v354_v21 = vrot.slane %v796_v24, %v814_v46 }
  0xb8   :  { %v315_v22 = vrot.slane %v798_v25, %v814_v46 }
  0xba   :  { %v800_v26 = vpop.xlane.xlu1 %106  ;;  %v316_v43 = vsel %vm158_vm6, %v315_v22, %v311_v17 }
  0xbb   :  { %v802_v28 = vpop.xlane.xlu0 %82  ;;  %v210_v8 = vrot.slane %v800_v26, %v816_v47 }
  0xbc   :  { %v164_v9 = vrot.slane %v802_v28, %v816_v47 }
  0xbd   :  { %v211_v26 = vsel %vm165_vm7, %v210_v8, %v206_v18 }
  0xbe   :  { %v804_v29 = vpop.xlane.xlu1 %271  ;;  %v166_v27 = vsel %vm165_vm7, %v164_v9, %v159_v20 }
  0xbf   :  { %v806_v31 = vpop.xlane.xlu0 %247  ;;  %v359_v28 = vrot.slane %v804_v29, %v816_v47 }
  0xc0   :  { %v320_v30 = vrot.slane %v806_v31, %v816_v47 }
  0xc2   :  { %v808_v35 = vpop.xlane.xlu1 %109  ;;  %v321_v47 = vsel %vm165_vm7, %v320_v30, %v316_v43 }
  0xc3   :  { %v810_v38 = vpop.xlane.xlu0 %85  ;;  %v215_v13 = vrot.slane %v808_v35, %v820_v49 }
  0xc4   :  { %v171_v14 = vrot.slane %v810_v38, %v820_v49  ;;  %v355_v38 = vsel %vm158_vm6, %v354_v21, %v350_v16 }
  0xc5   :  { %v216_v33 = vsel %vm172_vm8, %v215_v13, %v211_v26  ;;  %v360_v44 = vsel %vm165_vm7, %v359_v28, %v355_v38 }
  0xc6   :  { %v812_v45 = vpop.xlane.xlu1 %274  ;;  %v173_v24 = vsel %vm172_vm8, %v171_v14, %v166_v27 }
  0xc7   :  { %v818_v48 = vpop.xlane.xlu0 %250  ;;  %v364_v25 = vrot.slane %v812_v45, %v820_v49 }
  0xc8   :  { %v325_v36 = vrot.slane %v818_v48, %v820_v49 }
  0xc9   :  { %v365_v48 = vsel %vm172_vm8, %v364_v25, %v360_v44 }
  0xca   :  { %v113_v58 = vpop.xlane.xlu1 %112 }
  0xcb   :  { %v89_v63 = vpop.xlane.xlu0 %88  ;;  %v220_v19 = vrot.slane %v113_v58, %v822_v50 }
  0xcc   :  { %v178_v23 = vrot.slane %v89_v63, %v822_v50 }
  0xcd   :  { %v221_v37 = vsel %vm179_vm9, %v220_v19, %v216_v33 }
  0xce   :  { %v278_v10 = vpop.xlane.xlu1 %277  ;;  %v180_v39 = vsel %vm179_vm9, %v178_v23, %v173_v24 }
  0xcf   :  { %v254_v15 = vpop.xlane.xlu0 %253  ;;  %v369_v29 = vrot.slane %v278_v10, %v822_v50 }
  0xd0   :  { %v330_v40 = vrot.slane %v254_v15, %v822_v50  ;;  %v326_v50 = vsel %vm172_vm8, %v325_v36, %v321_v47 }
  0xd1   :  { %v370_v54 = vsel %vm179_vm9, %v369_v29, %v365_v48 }
  0xd2   :  { %v116_v32 = vpop.xlane.xlu1 %115  ;;  %v331_v57 = vsel %vm179_vm9, %v330_v40, %v326_v50 }
  0xd3   :  { %v225_v34 = vrot.slane %v116_v32, %v826_v53  ;;  %v92_v35 = vpop.xlane.xlu0 %91 }
  0xd4   :  { %v185_v31 = vrot.slane %v92_v35, %v826_v53 }
  0xd5   :  { %v226_v41 = vsel %vm186_vm10, %v225_v34, %v221_v37 }
  0xd6   :  { %v187_v45 = vsel %vm186_vm10, %v185_v31, %v180_v39  ;;  %v281_v46 = vpop.xlane.xlu1 %280 }
  0xd7   :  { %v228_v49 = vsel %vm227_vm11, %v226_v41, %v187_v45  ;;  %v374_v51 = vrot.slane %v281_v46, %v826_v53  ;;  %v257_v52 = vpop.xlane.xlu0 %256 }
  0xd8   :  { %v230_v55 = vadd.f32 %v228_v49, %v68_v42  ;;  %v335_v56 = vrot.slane %v257_v52, %v826_v53 }
  0xd9   :  { %v375_v58 = vsel %vm186_vm10, %v374_v51, %v370_v54 }
  0xda   :  { %232 = vst.msk [vmem:[#allocation2] sm:$0x3] %vm33_vm0, %v230_v55  ;;  %v336_v60 = vsel %vm186_vm10, %v335_v56, %v331_v57 }
  0xdb   :  { %v376_v61 = vsel %vm227_vm11, %v375_v58, %v336_v60 }
  0xdc   :  { %v378_v62 = vmax.f32 %v233_v59, %v376_v61 }
  0xde   :  { %379 = vst.msk [vmem:[#allocation3] sm:$0x3] %vm33_vm0, %v378_v62 }
  0xe1   :  { %v383_v63 = vld [vmem:[#allocation2] sm:$0x3] }
  0xe2   :  { %v384_v1 = vmul.f32 0.00390625, %v383_v63 }
  0xe5   :  { %v385_v0 = vld [vmem:[#allocation3] sm:$0x3] }
  0xe6   :  { %v387_v2 = vrot.slane %v385_v0, 6 }
  0xe8   :  { %v390_v53 = vsel %vm389_vm12, %v384_v1, %v387_v2 }
  0xe9   :  { %628 = vmatmul.mubr.msk.f32.vlgmr.msra.gmra.mxu0 %vm400_vm1, %v390_v53 }
 0x1a9   :  { %v473_v4 = vpop.f32.mrf.mxu0 }
 0x1aa   :  { %v477_v5 = vmax.f32 %v473_v4, 0.0 }
 0x1ab   :  { %v629_v6 = vpop.f32.mrf.mxu0 }
 0x1ac   :  { %647 = vmatmul.mubr.msk.f32.vlgmr.msra.gmra.mxu1 %vm478_vm3, %v477_v5 }
 0x26c   :  { %v572_v7 = vpop.f32.mrf.mxu1 }
 0x26d   :  { %v577_v8 = vrot.slane %v572_v7, 2 }
 0x26e   :  { %v648_v9 = vpop.f32.mrf.mxu1 }
 0x26f   :  { %v579_v10 = vadd.f32 %v577_v8, %v572_v7 }
 0x271   :  { %v613_v11 = vmul.f32 -1.442695, %v579_v10 }
 0x273   :  { %656 = vpow2.f32 %v613_v11 }
 0x280   :  { %v657_v12 = vpop.eup %656 }
 0x281   :  { %v583_v13 = vadd.f32 1.0, %v657_v12 }
 0x283   :  { %658 = vrcp.f32 %v583_v13 }
 0x290   :  { %v659_v14 = vpop.eup %658 }
 0x291   :  { %586 = vst.msk [vmem:[#allocation7] sm:$0x3] %vm33_vm0, %v659_v14 }
 0x292   :  { %691 = shalt.err (!%p688_p9)
}
 0x293   :  { %596 = dma.vmem_to_hbm [thread:$0]  %s594_s9, 32, %s915_s3, [#allocation6]  }
 0x294   :  { %702 = dma.done.wait [#allocation6], 32  }
 0x295   :  { %703 = vsyncadd [#allocation6], 4294967264 }
 0x296   :  { %600 = vsyncpa [#allocation5], 1 }
 0x297   :  { %601 = vsyncpa [#allocation6], 1 }

</bundles_post_ra>
